<compile_context>
chip_gen: v6e
topology: v6e:2x2x1
jax: 0.10.0
libtpu: 0.0.40
codegen_flags: <defaults>
</compile_context>

<pallas_src>
import jax
import jax.numpy as jnp
from jax.experimental import pallas as pl
from jax.experimental.pallas import tpu as pltpu


def _round_up(x, m):
    return (x + m - 1) // m * m


def generator_kernel(x_ref, w1_ref, b1_ref, w2_ref, b2_ref, w3_ref, b3_ref,
                     o_ref, h2_ref):
    # Layers 1 + 2: only on the first d_out tile of each batch tile; result is
    # cached in VMEM scratch (bf16) and reused for every d_out tile.
    @pl.when(pl.program_id(1) == 0)
    def _():
        h = jnp.dot(x_ref[...], w1_ref[...], preferred_element_type=jnp.float32)
        h = jnp.maximum(h + b1_ref[...], 0.0)               # bias + ReLU (f32, VPU)
        h = jnp.dot(h.astype(w2_ref.dtype), w2_ref[...],
                    preferred_element_type=jnp.float32)
        h = jnp.maximum(h + b2_ref[...], 0.0)
        h2_ref[...] = h.astype(h2_ref.dtype)

    # Layer 3 tile: (bm, 512) @ (512, tn) on the MXU, bias + tanh (EUP) in f32.
    h3 = jnp.dot(h2_ref[...], w3_ref[...], preferred_element_type=jnp.float32)
    o_ref[...] = jnp.tanh(h3 + b3_ref[...]).astype(o_ref.dtype)


def prepare_params(params, *, compute_dtype=jnp.bfloat16, block_n=2048):
    """One-time weight preprocessing (hoisted out of the per-call forward):
    pad the layer-1 K dim and d_out to lane-dense multiples, cast matmul
    operands to bf16, keep biases in f32."""
    w1, b1, w2, b2, w3, b3 = params
    d_in, d1 = w1.shape
    d2, d_out = w3.shape

    # Layer-1 contraction dim -> multiple of 128 (fills MXU K depth).
    d_in_p = _round_up(d_in, 128)
    if d_in_p != d_in:
        w1 = jnp.pad(w1, ((0, d_in_p - d_in), (0, 0)))

    # d_out -> lane-dense; if it exceeds block_n, pad to a multiple of block_n
    # so the N grid axis divides evenly.  Padded columns are zero -> tanh(0)=0.
    if d_out <= block_n:
        d_out_p = _round_up(d_out, 128)
    else:
        d_out_p = _round_up(d_out, block_n)
    if d_out_p != d_out:
        w3 = jnp.pad(w3, ((0, 0), (0, d_out_p - d_out)))
        b3 = jnp.pad(jnp.reshape(b3, (1, d_out)), ((0, 0), (0, d_out_p - d_out)))

    return dict(
        w1=w1.astype(compute_dtype), b1=jnp.reshape(b1, (1, d1)).astype(jnp.float32),
        w2=w2.astype(compute_dtype), b2=jnp.reshape(b2, (1, d2)).astype(jnp.float32),
        w3=w3.astype(compute_dtype), b3=jnp.reshape(b3, (1, d_out_p)).astype(jnp.float32),
        d_out=d_out, block_n=block_n, compute_dtype=compute_dtype,
    )


def generator_forward(x, prepared, *, block_m=512, out_dtype=jnp.float32):
    """x: (B, input_size) float32 -> (B, img_size**2) out_dtype."""
    w1, b1 = prepared["w1"], prepared["b1"]
    w2, b2 = prepared["w2"], prepared["b2"]
    w3, b3 = prepared["w3"], prepared["b3"]
    d_out = prepared["d_out"]
    block_n = prepared["block_n"]
    compute_dtype = prepared["compute_dtype"]

    B, d_in = x.shape
    d_in_p, d1 = w1.shape
    d2, d_out_p = w3.shape

    # Pad the activation K dim to match the pre-padded W1 rows (zeros are inert).
    if d_in_p != d_in:
        x = jnp.pad(x, ((0, 0), (0, d_in_p - d_in)))

    # Batch tiling:
    #  * tiny batches: align to 16 sublanes (bf16 pack) instead of inflating to 128
    #  * B >= 256: force >= 2 batch tiles so the "parallel" axis can shard
    #    across v7x's two TensorCores (no effect on single-TC v5e/v6e)
    if B < 128:
        bm = _round_up(B, 16)
    else:
        bm = min(block_m, _round_up(B, 128))
        if B >= 256:
            bm = min(bm, _round_up((B + 1) // 2, 128))
    B_pad = _round_up(B, bm)
    if B_pad != B:
        x = jnp.pad(x, ((0, B_pad - B), (0, 0)))
    x_c = x.astype(compute_dtype)

    tn = min(block_n, d_out_p)
    assert d_out_p % tn == 0
    grid = (B_pad // bm, d_out_p // tn)

    # Layer-1/2 weights & biases: constant index_map -> block never changes;
    # single-buffer them so the second pipeline buffer's VMEM isn't wasted.
    def resident(shape):
        return pl.BlockSpec(shape, lambda i, n: (0, 0),
                            pipeline_mode=pl.Buffered(1))

    nbytes = lambda a: a.size * a.dtype.itemsize
    cost = pl.CostEstimate(
        flops=2 * B_pad * (d_in_p * d1 + d1 * d2 + d2 * d_out_p),
        transcendentals=B_pad * d_out_p,  # tanh
        bytes_accessed=(nbytes(x_c) + nbytes(w1) + nbytes(w2) + nbytes(w3)
                        + nbytes(b1) + nbytes(b2) + nbytes(b3)
                        + B_pad * d_out_p * jnp.dtype(out_dtype).itemsize),
    )

    out = pl.pallas_call(
        generator_kernel,
        out_shape=jax.ShapeDtypeStruct((B_pad, d_out_p), out_dtype),
        grid=grid,
        in_specs=[
            pl.BlockSpec((bm, d_in_p), lambda i, n: (i, 0)),    # x batch tile
            resident((d_in_p, d1)), resident((1, d1)),          # layer 1 (resident)
            resident((d1, d2)), resident((1, d2)),              # layer 2 (resident)
            pl.BlockSpec((d2, tn), lambda i, n: (0, n)),        # W3 d_out tile
            pl.BlockSpec((1, tn), lambda i, n: (0, n)),         # b3 d_out tile
        ],
        out_specs=pl.BlockSpec((bm, tn), lambda i, n: (i, n)),
        scratch_shapes=[pltpu.VMEM((bm, d2), compute_dtype)],   # cached layer-2 output
        compiler_params=pltpu.CompilerParams(
            # Batch tiles are independent -> megacore-shard on v7x; d_out tiles
            # reuse the cached h2 so they must iterate in order ("arbitrary").
            dimension_semantics=("parallel", "arbitrary"),
        ),
        cost_estimate=cost,
    )(x_c, w1, b1, w2, b2, w3, b3)

    return out[:B, :d_out]


def init_params(key, input_size, img_size):
    """Deterministic init mimicking nn.Linear (uniform +/- 1/sqrt(fan_in)).
    Weights in (in, out) layout (transpose of PyTorch's (out, in))."""
    dims = [(input_size, 256), (256, 512), (512, img_size ** 2)]
    params = []
    for (fan_in, fan_out) in dims:
        key, kw, kb = jax.random.split(key, 3)
        bound = 1.0 / jnp.sqrt(fan_in)
        w = jax.random.uniform(kw, (fan_in, fan_out), jnp.float32, -bound, bound)
        b = jax.random.uniform(kb, (1, fan_out), jnp.float32, -bound, bound)
        params += [w, b]
    return tuple(params)


def reference_forward(x, params):
    w1, b1, w2, b2, w3, b3 = params
    h = jnp.maximum(x @ w1 + b1, 0.0)
    h = jnp.maximum(h @ w2 + b2, 0.0)
    return jnp.tanh(h @ w3 + b3)


if __name__ == "__main__":
    key = jax.random.PRNGKey(0)
    input_size = 64
    batch = 16

    # img_size=16 -> d_out=256 (already lane-dense); img_size=28 -> d_out=784,
    # exercising the d_out padding-to-896 + column-slice path.
    for img_size in (16, 28):
        kcase = jax.random.fold_in(key, img_size)
        kx, kp = jax.random.split(kcase)
        x = jax.random.normal(kx, (batch, input_size), jnp.float32)
        params = init_params(kp, input_size, img_size)

        prepared = prepare_params(params)          # one-time pad + bf16 cast
        out = jax.block_until_ready(generator_forward(x, prepared))

        ref = reference_forward(x, params)
        assert out.shape == (batch, img_size ** 2), out.shape
        # bf16 matmul operands -> compare against f32 reference with loosened tol.
        assert jnp.allclose(out, ref, atol=2e-2, rtol=2e-2), \
            f"mismatch vs reference (img_size={img_size})"

    print("KERNEL_OK")
</pallas_src>

<mosaic_0001>
module attributes {stable_mosaic.version = 11 : i64} {
  func.func @generator_kernel(%arg0: i32, %arg1: i32, %arg2: memref<16x128xbf16, #tpu.memory_space<vmem>>, %arg3: memref<128x256xbf16, #tpu.memory_space<vmem>>, %arg4: memref<1x256xf32, #tpu.memory_space<vmem>>, %arg5: memref<256x512xbf16, #tpu.memory_space<vmem>>, %arg6: memref<1x512xf32, #tpu.memory_space<vmem>>, %arg7: memref<512x256xbf16, #tpu.memory_space<vmem>>, %arg8: memref<1x256xf32, #tpu.memory_space<vmem>>, %arg9: memref<16x256xf32, #tpu.memory_space<vmem>>, %arg10: memref<16x512xbf16, #tpu.memory_space<vmem>>) attributes {dimension_semantics = [#tpu.dimension_semantics<parallel>, #tpu.dimension_semantics<arbitrary>], iteration_bounds = array<i64: 1, 1>, scalar_prefetch = 0 : i64, scratch_operands = 1 : i64, tpu.core_type = #tpu.core_type<tc>, window_params = [{transform_indices = @transform_0, window_bounds = array<i64: 16, 128>}, {pipeline_mode = #tpu.pipeline_mode<synchronous>, transform_indices = @transform_1, window_bounds = array<i64: 128, 256>}, {pipeline_mode = #tpu.pipeline_mode<synchronous>, transform_indices = @transform_2, window_bounds = array<i64: 1, 256>}, {pipeline_mode = #tpu.pipeline_mode<synchronous>, transform_indices = @transform_3, window_bounds = array<i64: 256, 512>}, {pipeline_mode = #tpu.pipeline_mode<synchronous>, transform_indices = @transform_4, window_bounds = array<i64: 1, 512>}, {transform_indices = @transform_5, window_bounds = array<i64: 512, 256>}, {transform_indices = @transform_6, window_bounds = array<i64: 1, 256>}, {transform_indices = @transform_7, window_bounds = array<i64: 16, 256>}]} {
    %c0_i32 = arith.constant 0 : i32
    %0 = arith.cmpi eq, %arg1, %c0_i32 : i32
    %1 = arith.extui %0 : i1 to i32
    %c0_i32_0 = arith.constant 0 : i32
    %2 = arith.cmpi ne, %1, %c0_i32_0 : i32
    scf.if %2 {
      %c0_8 = arith.constant 0 : index
      %c0_9 = arith.constant 0 : index
      %11 = vector.load %arg2[%c0_8, %c0_9] : memref<16x128xbf16, #tpu.memory_space<vmem>>, vector<16x128xbf16>
      %c0_10 = arith.constant 0 : index
      %c0_11 = arith.constant 0 : index
      %12 = vector.load %arg3[%c0_10, %c0_11] : memref<128x256xbf16, #tpu.memory_space<vmem>>, vector<128x256xbf16>
      %cst_12 = arith.constant dense<0.000000e+00> : vector<16x256xf32>
      %13 = tpu.matmul %11, %12, %cst_12 {dimension_numbers = #tpu.dot_dimension_numbers<[1], [0], [0], [1], [0, 0, 1, 1], [], []>} : vector<16x128xbf16>, vector<128x256xbf16>, vector<16x256xf32> -> vector<16x256xf32>
      %c0_13 = arith.constant 0 : index
      %c0_14 = arith.constant 0 : index
      %14 = vector.load %arg4[%c0_13, %c0_14] : memref<1x256xf32, #tpu.memory_space<vmem>>, vector<1x256xf32>
      %15 = vector.broadcast %14 : vector<1x256xf32> to vector<16x256xf32>
      %16 = arith.addf %13, %15 : vector<16x256xf32>
      %cst_15 = arith.constant 0.000000e+00 : f32
      %17 = vector.broadcast %cst_15 : f32 to vector<16x256xf32>
      %18 = arith.maximumf %16, %17 : vector<16x256xf32>
      %19 = arith.truncf %18 : vector<16x256xf32> to vector<16x256xbf16>
      %c0_16 = arith.constant 0 : index
      %c0_17 = arith.constant 0 : index
      %20 = vector.load %arg5[%c0_16, %c0_17] : memref<256x512xbf16, #tpu.memory_space<vmem>>, vector<256x512xbf16>
      %cst_18 = arith.constant dense<0.000000e+00> : vector<16x512xf32>
      %21 = tpu.matmul %19, %20, %cst_18 {dimension_numbers = #tpu.dot_dimension_numbers<[1], [0], [0], [1], [0, 0, 1, 1], [], []>} : vector<16x256xbf16>, vector<256x512xbf16>, vector<16x512xf32> -> vector<16x512xf32>
      %c0_19 = arith.constant 0 : index
      %c0_20 = arith.constant 0 : index
      %22 = vector.load %arg6[%c0_19, %c0_20] : memref<1x512xf32, #tpu.memory_space<vmem>>, vector<1x512xf32>
      %23 = vector.broadcast %22 : vector<1x512xf32> to vector<16x512xf32>
      %24 = arith.addf %21, %23 : vector<16x512xf32>
      %cst_21 = arith.constant 0.000000e+00 : f32
      %25 = vector.broadcast %cst_21 : f32 to vector<16x512xf32>
      %26 = arith.maximumf %24, %25 : vector<16x512xf32>
      %27 = arith.truncf %26 : vector<16x512xf32> to vector<16x512xbf16>
      %c0_22 = arith.constant 0 : index
      %c0_23 = arith.constant 0 : index
      %28 = vector.load %arg10[%c0_22, %c0_23] : memref<16x512xbf16, #tpu.memory_space<vmem>>, vector<16x512xbf16>
      tpu.vector_store %arg10[%c0_22, %c0_23], %27 {strides = array<i32>} : memref<16x512xbf16, #tpu.memory_space<vmem>>, vector<16x512xbf16>,
    } else {
    }
    %c0 = arith.constant 0 : index
    %c0_1 = arith.constant 0 : index
    %3 = vector.load %arg10[%c0, %c0_1] : memref<16x512xbf16, #tpu.memory_space<vmem>>, vector<16x512xbf16>
    %c0_2 = arith.constant 0 : index
    %c0_3 = arith.constant 0 : index
    %4 = vector.load %arg7[%c0_2, %c0_3] : memref<512x256xbf16, #tpu.memory_space<vmem>>, vector<512x256xbf16>
    %cst = arith.constant dense<0.000000e+00> : vector<16x256xf32>
    %5 = tpu.matmul %3, %4, %cst {dimension_numbers = #tpu.dot_dimension_numbers<[1], [0], [0], [1], [0, 0, 1, 1], [], []>} : vector<16x512xbf16>, vector<512x256xbf16>, vector<16x256xf32> -> vector<16x256xf32>
    %c0_4 = arith.constant 0 : index
    %c0_5 = arith.constant 0 : index
    %6 = vector.load %arg8[%c0_4, %c0_5] : memref<1x256xf32, #tpu.memory_space<vmem>>, vector<1x256xf32>
    %7 = vector.broadcast %6 : vector<1x256xf32> to vector<16x256xf32>
    %8 = arith.addf %5, %7 : vector<16x256xf32>
    %9 = math.tanh %8 : vector<16x256xf32>
    %c0_6 = arith.constant 0 : index
    %c0_7 = arith.constant 0 : index
    %10 = vector.load %arg9[%c0_6, %c0_7] : memref<16x256xf32, #tpu.memory_space<vmem>>, vector<16x256xf32>
    tpu.vector_store %arg9[%c0_6, %c0_7], %9 {strides = array<i32>} : memref<16x256xf32, #tpu.memory_space<vmem>>, vector<16x256xf32>,
    return
  }
  func.func @transform_0(%arg0: i32, %arg1: i32) -> (i32, i32) {
    %c0_i32 = arith.constant 0 : i32
    %c0_i32_0 = arith.constant 0 : i32
    return %arg0, %c0_i32 : i32, i32
  }
  func.func @transform_1(%arg0: i32, %arg1: i32) -> (i32, i32) {
    %c0_i32 = arith.constant 0 : i32
    %c0_i32_0 = arith.constant 0 : i32
    %c0_i32_1 = arith.constant 0 : i32
    return %c0_i32, %c0_i32_0 : i32, i32
  }
  func.func @transform_2(%arg0: i32, %arg1: i32) -> (i32, i32) {
    %c0_i32 = arith.constant 0 : i32
    %c0_i32_0 = arith.constant 0 : i32
    %c0_i32_1 = arith.constant 0 : i32
    return %c0_i32, %c0_i32_0 : i32, i32
  }
  func.func @transform_3(%arg0: i32, %arg1: i32) -> (i32, i32) {
    %c0_i32 = arith.constant 0 : i32
    %c0_i32_0 = arith.constant 0 : i32
    %c0_i32_1 = arith.constant 0 : i32
    return %c0_i32, %c0_i32_0 : i32, i32
  }
  func.func @transform_4(%arg0: i32, %arg1: i32) -> (i32, i32) {
    %c0_i32 = arith.constant 0 : i32
    %c0_i32_0 = arith.constant 0 : i32
    %c0_i32_1 = arith.constant 0 : i32
    return %c0_i32, %c0_i32_0 : i32, i32
  }
  func.func @transform_5(%arg0: i32, %arg1: i32) -> (i32, i32) {
    %c0_i32 = arith.constant 0 : i32
    %c0_i32_0 = arith.constant 0 : i32
    return %c0_i32, %arg1 : i32, i32
  }
  func.func @transform_6(%arg0: i32, %arg1: i32) -> (i32, i32) {
    %c0_i32 = arith.constant 0 : i32
    %c0_i32_0 = arith.constant 0 : i32
    return %c0_i32, %arg1 : i32, i32
  }
  func.func @transform_7(%arg0: i32, %arg1: i32) -> (i32, i32) {
    %c0_i32 = arith.constant 0 : i32
    return %arg0, %arg1 : i32, i32
  }
}

</mosaic_0001>

<bundles_post_ra>
// kernel: tpu_custom_call.1
= control target key start
LH: loop header
LB: loop body
LE: loop exit
PB: predicated region body
PF: predicated region fallthrough
CT: control target
= control target key end

     0   :  { %12 = vsyncpa [#allocation4], 0  ;;  %s1923_s0 = inlined_call_operand.hbm [shape: bf16[16,128], index: 0, kind: input, shape index: {}]   ;;  %s1924_s1 = inlined_call_operand.hbm [shape: bf16[128,256], index: 1, kind: input, shape index: {}]   ;;  %s1925_s2 = inlined_call_operand.vmem [shape: f32[1,256], index: 2, kind: input, shape index: {}]   ;;  %s1926_s3 = inlined_call_operand.hbm [shape: bf16[256,512], index: 3, kind: input, shape index: {}]   ;;  %s1927_s4 = inlined_call_operand.vmem [shape: f32[1,512], index: 4, kind: input, shape index: {}]   ;;  %s1928_s5 = inlined_call_operand.hbm [shape: bf16[512,256], index: 5, kind: input, shape index: {}]   ;;  %s1929_s6 = inlined_call_operand.vmem [shape: f32[1,256], index: 6, kind: input, shape index: {}]   ;;  %s1930_s7 = inlined_call_operand.hbm [shape: f32[16,256], index: 7, kind: output, shape index: {}]  }
   0x1   :  { %13 = vsyncpa [#allocation7], 0 }
   0x2   :  { %14 = vsyncpa [#allocation10], 0 }
   0x3   :  { %15 = vsyncpa [#allocation5], 0  ;;  %s1819_s24 = smov [#allocation6]  }
   0x4   :  { %s33_s25 = sshll.u32 %s1819_s24, 4  ;;  %s34_s25 = int_to_ptr.vmem [resolvable:$true] %s33_s25 }
   0x5   :  { %s1719_s26 = scalar_lea.vmem %s34_s25, 2048  ;;  %p1724_p1 = scmp.lt.s32.totalorder %s34_s25, %s34_s25 }
   0x6   :  { %p1720_p0 = scmp.ne.s32.totalorder %s34_s25, %s1719_s26  ;;  %p1725_p2 = scmp.lt.s32.totalorder %s1719_s26, %s1719_s26 }
   0x8   :  { %p1726_p3 = por %p1725_p2, %p1724_p1 }
   0xa   :  { %p1727_p4 = pnand %p1726_p3, %p1720_p0 }
   0xc   :  { %1730 = shalt.err (!%p1727_p4)
}
   0xd   :  { %s1820_s27 = smov 128   ;;  %s1821_s28 = smov 8  }
   0xe   :  { %39 = dma.hbm_to_vmem [thread:$0]  %s1924_s1, 2048, %s34_s25, [#allocation7], %s1820_s27, %s1820_s27, %s1821_s28  }
   0xf   :  { %s1822_s8 = smov [#allocation3]  }
  0x10   :  { %s21_s9 = sshll.u32 %s1822_s8, 4  ;;  %s22_s9 = int_to_ptr.vmem [resolvable:$true] %s21_s9 }
  0x11   :  { %s1739_s10 = scalar_lea.vmem %s22_s9, 128  ;;  %p1744_p6 = scmp.lt.s32.totalorder %s22_s9, %s22_s9 }
  0x12   :  { %p1740_p5 = scmp.ne.s32.totalorder %s22_s9, %s1739_s10  ;;  %p1745_p7 = scmp.lt.s32.totalorder %s1739_s10, %s1739_s10 }
  0x14   :  { %p1746_p8 = por %p1745_p7, %p1744_p6 }
  0x16   :  { %p1747_p9 = pnand %p1746_p8, %p1740_p5 }
  0x18   :  { %1750 = shalt.err (!%p1747_p9)
}
  0x19   :  { %s1823_s11 = smov 64   ;;  %s1824_s12 = smov 4  }
  0x1a   :  { %27 = dma.hbm_to_vmem [thread:$0]  %s1923_s0, 128, %s22_s9, [#allocation4], %s1823_s11, %s1823_s11, %s1824_s12  }
  0x1b   :  { %s1825_s15 = smov [#allocation8]  }
  0x1c   :  { %s47_s16 = sshll.u32 %s1825_s15, 4  ;;  %s48_s16 = int_to_ptr.vmem [resolvable:$true] %s47_s16 }
  0x1d   :  { %s1759_s1 = scalar_lea.vmem %s48_s16, 8192  ;;  %p1764_p11 = scmp.lt.s32.totalorder %s48_s16, %s48_s16 }
  0x1e   :  { %p1760_p10 = scmp.ne.s32.totalorder %s48_s16, %s1759_s1  ;;  %p1765_p12 = scmp.lt.s32.totalorder %s1759_s1, %s1759_s1 }
  0x20   :  { %p1766_p13 = por %p1765_p12, %p1764_p11 }
  0x22   :  { %p1767_p0 = pnand %p1766_p13, %p1760_p10 }
  0x24   :  { %1770 = shalt.err (!%p1767_p0)
}
  0x25   :  { %s1826_s17 = smov 256   ;;  %s1827_s18 = smov 16  }
  0x26   :  { %53 = dma.hbm_to_vmem [thread:$0]  %s1926_s3, 8192, %s48_s16, [#allocation7], %s1826_s17, %s1826_s17, %s1827_s18  }
  0x27   :  { %s1828_s0 = smov [#allocation9]  }
  0x28   :  { %s61_s21 = sshll.u32 %s1828_s0, 4  ;;  %s62_s21 = int_to_ptr.vmem [resolvable:$true] %s61_s21 }
  0x29   :  { %s1779_s22 = scalar_lea.vmem %s62_s21, 8192  ;;  %p1784_p2 = scmp.lt.s32.totalorder %s62_s21, %s62_s21 }
  0x2a   :  { %p1780_p1 = scmp.ne.s32.totalorder %s62_s21, %s1779_s22  ;;  %p1785_p3 = scmp.lt.s32.totalorder %s1779_s22, %s1779_s22 }
  0x2c   :  { %p1786_p4 = por %p1785_p3, %p1784_p2 }
  0x2e   :  { %p1787_p5 = pnand %p1786_p4, %p1780_p1 }
  0x30   :  { %1790 = shalt.err (!%p1787_p5)
}
  0x31   :  { %67 = dma.hbm_to_vmem [thread:$0]  %s1928_s5, 8192, %s62_s21, [#allocation10], %s1820_s27, %s1820_s27, %s1821_s28  }
  0x32   :  { %1811 = dma.done.wait [#allocation4], 128  }
  0x33   :  { %1812 = vsyncadd [#allocation4], 4294967168 }
  0x34   :  { %1813 = dma.done.wait [#allocation7], 10240  }
  0x35   :  { %1814 = vsyncadd [#allocation7], 4294957056 }
  0x36   :  { %1815 = dma.done.wait [#allocation10], 8192  }
  0x37   :  { %1816 = vsyncadd [#allocation10], 4294959104  ;;  %v1829_v0 = vmov 0   ;;  %v1486_v1 = vld [vmem:[#allocation6 + $0x74] ss:$8 sps:$4 sm:$0xff]  }
  0x38   :  { %235 = vmatprep.mubr.bf16.mxu0 %v1829_v0  ;;  %v1488_v2 = vld [vmem:[#allocation6 + $0x70] ss:$8 sps:$4 sm:$0xff]   ;;  %203 = vmatprep.subr.bf16.mxu0 %v1486_v1  ;;  %v1489_v3 = vld [vmem:[#allocation6 + $0x64] ss:$8 sps:$4 sm:$0xff]   ;;  %v1491_v4 = vld [vmem:[#allocation6 + $0x60] ss:$8 sps:$4 sm:$0xff]  }
  0x39   :  { %204 = vmatpush1.bf16.msra.mxu0 %v1488_v2  ;;  %v1492_v5 = vld [vmem:[#allocation6 + $0x54] ss:$8 sps:$4 sm:$0xff]   ;;  %v1494_v6 = vld [vmem:[#allocation6 + $0x50] ss:$8 sps:$4 sm:$0xff]   ;;  %v1495_v7 = vld [vmem:[#allocation6 + $0x44] ss:$8 sps:$4 sm:$0xff]  }
  0x3a   :  { %205 = vmatprep.subr.bf16.mxu0 %v1489_v3  ;;  %v1497_v8 = vld [vmem:[#allocation6 + $0x40] ss:$8 sps:$4 sm:$0xff]   ;;  %v1498_v9 = vld [vmem:[#allocation6 + $0x34] ss:$8 sps:$4 sm:$0xff]   ;;  %v1500_v11 = vld [vmem:[#allocation6 + $0x30] ss:$8 sps:$4 sm:$0xff]  }
  0x3b   :  { %v1511_v10 = vld [vmem:[#allocation8 + $0xe4] ss:$16 sps:$4 sm:$0xff]   ;;  %v1516_v12 = vld [vmem:[#allocation8 + $0xe0] ss:$16 sps:$4 sm:$0xff]   ;;  %v1515_v26 = vld [vmem:[#allocation8 + $0xec] ss:$16 sps:$4 sm:$0xff]  }
  0x3c   :  { %658 = vmatprep.subr.bf16.mxu1 %v1511_v10  ;;  %v1517_v13 = vld [vmem:[#allocation8 + $0xc4] ss:$16 sps:$4 sm:$0xff]   ;;  %v1522_v15 = vld [vmem:[#allocation8 + $0xc0] ss:$16 sps:$4 sm:$0xff]   ;;  %v1510_v29 = vld [vmem:[#allocation3] sm:$0xff]  }
  0x3d   :  { %206 = vmatpush1.bf16.msra.mxu0 %v1491_v4  ;;  %v1501_v14 = vld [vmem:[#allocation6 + $0x24] ss:$8 sps:$4 sm:$0xff]   ;;  %659 = vmatpush1.bf16.msra.mxu1 %v1516_v12  ;;  %v1503_v17 = vld [vmem:[#allocation6 + $0x20] ss:$8 sps:$4 sm:$0xff]   ;;  %v1504_v18 = vld [vmem:[#allocation6 + $0x14] ss:$8 sps:$4 sm:$0xff]  }
  0x3e   :  { %207 = vmatprep.subr.bf16.mxu0 %v1492_v5  ;;  %660 = vmatprep.subr.bf16.mxu1 %v1517_v13  ;;  %v1523_v16 = vld [vmem:[#allocation8 + $0xa4] ss:$16 sps:$4 sm:$0xff]   ;;  %v1528_v19 = vld [vmem:[#allocation8 + $0xa0] ss:$16 sps:$4 sm:$0xff]   ;;  %v1513_v30 = vld [vmem:[#allocation8 + $0xe8] ss:$16 sps:$4 sm:$0xff]  }
  0x3f   :  { %v1529_v20 = vld [vmem:[#allocation8 + $0x84] ss:$16 sps:$4 sm:$0xff]   ;;  %v1506_v21 = vld [vmem:[#allocation6 + $0x10] ss:$8 sps:$4 sm:$0xff]   ;;  %v1509_v25 = vld [vmem:[#allocation6] ss:$8 sps:$4 sm:$0xff]  }
  0x40   :  { %v1507_v22 = vld [vmem:[#allocation6 + $0x4] ss:$8 sps:$4 sm:$0xff]   ;;  %v1534_v23 = vld [vmem:[#allocation8 + $0x80] ss:$16 sps:$4 sm:$0xff]   ;;  %v1519_v34 = vld [vmem:[#allocation8 + $0xc8] ss:$16 sps:$4 sm:$0xff]  }
  0x41   :  { %208 = vmatpush1.bf16.msra.mxu0 %v1494_v6  ;;  %661 = vmatpush1.bf16.msra.mxu1 %v1522_v15  ;;  %v1535_v24 = vld [vmem:[#allocation8 + $0x64] ss:$16 sps:$4 sm:$0xff]   ;;  %v1540_v27 = vld [vmem:[#allocation8 + $0x60] ss:$16 sps:$4 sm:$0xff]   ;;  %v1521_v31 = vld [vmem:[#allocation8 + $0xcc] ss:$16 sps:$4 sm:$0xff]  }
  0x42   :  { %209 = vmatprep.subr.bf16.mxu0 %v1495_v7  ;;  %662 = vmatprep.subr.bf16.mxu1 %v1523_v16  ;;  %v1541_v28 = vld [vmem:[#allocation8 + $0x44] ss:$16 sps:$4 sm:$0xff]   ;;  %v1546_v32 = vld [vmem:[#allocation8 + $0x40] ss:$16 sps:$4 sm:$0xff]   ;;  %v1527_v35 = vld [vmem:[#allocation8 + $0xac] ss:$16 sps:$4 sm:$0xff]  }
  0x43   :  { %v1547_v33 = vld [vmem:[#allocation8 + $0x24] ss:$16 sps:$4 sm:$0xff]   ;;  %v1552_v36 = vld [vmem:[#allocation8 + $0x20] ss:$16 sps:$4 sm:$0xff]   ;;  %v1525_v38 = vld [vmem:[#allocation8 + $0xa8] ss:$16 sps:$4 sm:$0xff]  }
  0x44   :  { %v1553_v37 = vld [vmem:[#allocation8 + $0x4] ss:$16 sps:$4 sm:$0xff]   ;;  %v1533_v39 = vld [vmem:[#allocation8 + $0x8c] ss:$16 sps:$4 sm:$0xff]   ;;  %v1558_v40 = vld [vmem:[#allocation8] ss:$16 sps:$4 sm:$0xff]  }
  0x45   :  { %210 = vmatpush1.bf16.msra.mxu0 %v1497_v8  ;;  %663 = vmatpush1.bf16.msra.mxu1 %v1528_v19  ;;  %v1559_v41 = vld [vmem:[#allocation8 + $0x1e4] ss:$16 sps:$4 sm:$0xff]   ;;  %v1531_v42 = vld [vmem:[#allocation8 + $0x88] ss:$16 sps:$4 sm:$0xff]   ;;  %v1539_v43 = vld [vmem:[#allocation8 + $0x6c] ss:$16 sps:$4 sm:$0xff]  }
  0x46   :  { %211 = vmatprep.subr.bf16.mxu0 %v1498_v9  ;;  %664 = vmatprep.subr.bf16.mxu1 %v1529_v20  ;;  %v1564_v44 = vld [vmem:[#allocation8 + $0x1e0] ss:$16 sps:$4 sm:$0xff]   ;;  %v1537_v45 = vld [vmem:[#allocation8 + $0x68] ss:$16 sps:$4 sm:$0xff]   ;;  %v1565_v46 = vld [vmem:[#allocation8 + $0x1c4] ss:$16 sps:$4 sm:$0xff]   ;;  %v107_v20 = vlaneseq }
  0x47   :  { %v1545_v47 = vld [vmem:[#allocation8 + $0x4c] ss:$16 sps:$4 sm:$0xff]   ;;  %v1570_v48 = vld [vmem:[#allocation8 + $0x1c0] ss:$16 sps:$4 sm:$0xff]   ;;  %v1571_v49 = vld [vmem:[#allocation8 + $0x1a4] ss:$16 sps:$4 sm:$0xff]  }
  0x48   :  { %v1543_v50 = vld [vmem:[#allocation8 + $0x48] ss:$16 sps:$4 sm:$0xff]   ;;  %v1551_v51 = vld [vmem:[#allocation8 + $0x2c] ss:$16 sps:$4 sm:$0xff]   ;;  %v1576_v52 = vld [vmem:[#allocation8 + $0x1a0] ss:$16 sps:$4 sm:$0xff]  }
  0x49   :  { %212 = vmatpush1.bf16.msra.mxu0 %v1500_v11  ;;  %665 = vmatpush1.bf16.msra.mxu1 %v1534_v23  ;;  %v1577_v53 = vld [vmem:[#allocation8 + $0x184] ss:$16 sps:$4 sm:$0xff]   ;;  %v1549_v54 = vld [vmem:[#allocation8 + $0x28] ss:$16 sps:$4 sm:$0xff]   ;;  %v1557_v55 = vld [vmem:[#allocation8 + $0xc] ss:$16 sps:$4 sm:$0xff]  }
  0x4a   :  { %213 = vmatprep.subr.bf16.mxu0 %v1501_v14  ;;  %666 = vmatprep.subr.bf16.mxu1 %v1535_v24  ;;  %v1582_v56 = vld [vmem:[#allocation8 + $0x180] ss:$16 sps:$4 sm:$0xff]   ;;  %v1583_v57 = vld [vmem:[#allocation8 + $0x164] ss:$16 sps:$4 sm:$0xff]   ;;  %v1555_v58 = vld [vmem:[#allocation8 + $0x8] ss:$16 sps:$4 sm:$0xff]  }
  0x4b   :  { %v1563_v59 = vld [vmem:[#allocation8 + $0x1ec] ss:$16 sps:$4 sm:$0xff]   ;;  %v1588_v60 = vld [vmem:[#allocation8 + $0x160] ss:$16 sps:$4 sm:$0xff]   ;;  %v1561_v61 = vld [vmem:[#allocation8 + $0x1e8] ss:$16 sps:$4 sm:$0xff]  }
  0x4c   :  { %v1569_v62 = vld [vmem:[#allocation8 + $0x1cc] ss:$16 sps:$4 sm:$0xff]   ;;  %v1567_v63 = vld [vmem:[#allocation8 + $0x1c8] ss:$16 sps:$4 sm:$0xff]   ;;  %v1589_v6 = vld [vmem:[#allocation8 + $0x144] ss:$16 sps:$4 sm:$0xff]  }
  0x4d   :  { %214 = vmatpush1.bf16.msra.mxu0 %v1503_v17  ;;  %667 = vmatpush1.bf16.msra.mxu1 %v1540_v27  ;;  %v1575_v0 = vld [vmem:[#allocation8 + $0x1ac] ss:$16 sps:$4 sm:$0xff]   ;;  %v1573_v1 = vld [vmem:[#allocation8 + $0x1a8] ss:$16 sps:$4 sm:$0xff]   ;;  %v1594_v9 = vld [vmem:[#allocation8 + $0x140] ss:$16 sps:$4 sm:$0xff]  }
  0x4e   :  { %215 = vmatprep.subr.bf16.mxu0 %v1504_v18  ;;  %668 = vmatprep.subr.bf16.mxu1 %v1541_v28  ;;  %v1581_v2 = vld [vmem:[#allocation8 + $0x18c] ss:$16 sps:$4 sm:$0xff]   ;;  %v1579_v3 = vld [vmem:[#allocation8 + $0x188] ss:$16 sps:$4 sm:$0xff]   ;;  %v1595_v10 = vld [vmem:[#allocation8 + $0x124] ss:$16 sps:$4 sm:$0xff]  }
  0x4f   :  { %v1587_v4 = vld [vmem:[#allocation8 + $0x16c] ss:$16 sps:$4 sm:$0xff]   ;;  %v1585_v5 = vld [vmem:[#allocation8 + $0x168] ss:$16 sps:$4 sm:$0xff]   ;;  %v1600_v13 = vld [vmem:[#allocation8 + $0x120] ss:$16 sps:$4 sm:$0xff]  }
  0x50   :  { %v1593_v7 = vld [vmem:[#allocation8 + $0x14c] ss:$16 sps:$4 sm:$0xff]   ;;  %v1591_v8 = vld [vmem:[#allocation8 + $0x148] ss:$16 sps:$4 sm:$0xff]   ;;  %v1601_v14 = vld [vmem:[#allocation8 + $0x104] ss:$16 sps:$4 sm:$0xff]  }
  0x51   :  { %216 = vmatpush1.bf16.msra.mxu0 %v1506_v21  ;;  %669 = vmatpush1.bf16.msra.mxu1 %v1546_v32  ;;  %v1599_v11 = vld [vmem:[#allocation8 + $0x12c] ss:$16 sps:$4 sm:$0xff]   ;;  %v1597_v12 = vld [vmem:[#allocation8 + $0x128] ss:$16 sps:$4 sm:$0xff]   ;;  %v1606_v17 = vld [vmem:[#allocation8 + $0x100] ss:$16 sps:$4 sm:$0xff]  }
  0x52   :  { %217 = vmatprep.subr.bf16.mxu0 %v1507_v22  ;;  %670 = vmatprep.subr.bf16.mxu1 %v1547_v33  ;;  %v1605_v15 = vld [vmem:[#allocation8 + $0x10c] ss:$16 sps:$4 sm:$0xff]   ;;  %v1603_v16 = vld [vmem:[#allocation8 + $0x108] ss:$16 sps:$4 sm:$0xff]   ;;  %v1892_v21 = vshrl.u32 %v107_v20, 7 }
  0x53   :  { %v1609_v18 = vld [vmem:[#allocation9 + $0x74] ss:$8 sps:$4 sm:$0xff]   ;;  %v105_v24 = vld [vmem:[%s1925_s2] sm:$0x3]  ;;  %v1678_v20 = vld [vmem:[#allocation9 + $0x1c4] ss:$8 sps:$4 sm:$0xff]  }
  0x54   :  { %v1612_v19 = vld [vmem:[#allocation9 + $0x174] ss:$8 sps:$4 sm:$0xff]   ;;  %v1895_v22 = vsub.s32 1, %v1892_v21  ;;  %v1898_v23 = vsub.s32 0, %v1892_v21 }
  0x55   :  { %218 = vmatpush1.bf16.msra.mxu0 %v1509_v25  ;;  %671 = vmatpush1.bf16.msra.mxu1 %v1552_v36 }
  0x56   :  { %701 = vmatprep.subr.bf16.mxu0 %v1515_v26  ;;  %672 = vmatprep.subr.bf16.mxu1 %v1553_v37  ;;  %v114_v26 = vrot.slane %v105_v24, %v1895_v22  ;;  %v110_v27 = vrot.slane %v105_v24, %v1898_v23  ;;  %v1673_v24 = vld [vmem:[#allocation9 + $0xc0] ss:$8 sps:$4 sm:$0xff]  }
  0x58   :  { %236 = vmatmul.mubr.bf16.vlgmr.msra.gmra.mxu0 %v1510_v29 }
  0x59   :  { %702 = vmatpush1.bf16.msra.mxu0 %v1513_v30  ;;  %673 = vmatpush1.bf16.msra.mxu1 %v1558_v40  ;;  %v1607_v40 = vld [vmem:[#allocation9 + $0x70] ss:$8 sps:$4 sm:$0xff]  }
  0x5a   :  { %703 = vmatprep.subr.bf16.mxu0 %v1521_v31  ;;  %674 = vmatprep.subr.bf16.mxu1 %v1559_v41  ;;  %v1610_v41 = vld [vmem:[#allocation9 + $0x170] ss:$8 sps:$4 sm:$0xff]  }
  0x5d   :  { %704 = vmatpush1.bf16.msra.mxu0 %v1519_v34  ;;  %675 = vmatpush2.bf16.msra.mxu1 %v1564_v44  ;;  %v1618_v44 = vld [vmem:[#allocation9 + $0x164] ss:$8 sps:$4 sm:$0xff]  }
  0x5e   :  { %705 = vmatprep.subr.bf16.mxu0 %v1527_v35  ;;  %676 = vmatprep.subr.bf16.mxu1 %v1565_v46  ;;  %v1616_v46 = vld [vmem:[#allocation9 + $0x160] ss:$8 sps:$4 sm:$0xff]  }
  0x61   :  { %706 = vmatpush1.bf16.msra.mxu0 %v1525_v38  ;;  %677 = vmatpush2.bf16.msra.mxu1 %v1570_v48  ;;  %v1624_v48 = vld [vmem:[#allocation9 + $0x154] ss:$8 sps:$4 sm:$0xff]  }
  0x62   :  { %707 = vmatprep.subr.bf16.mxu0 %v1533_v39  ;;  %678 = vmatprep.subr.bf16.mxu1 %v1571_v49  ;;  %v1619_v49 = vld [vmem:[#allocation9 + $0x50] ss:$8 sps:$4 sm:$0xff]  }
  0x65   :  { %708 = vmatpush1.bf16.msra.mxu0 %v1531_v42  ;;  %679 = vmatpush2.bf16.msra.mxu1 %v1576_v52  ;;  %v1630_v52 = vld [vmem:[#allocation9 + $0x144] ss:$8 sps:$4 sm:$0xff]  }
  0x66   :  { %709 = vmatprep.subr.bf16.mxu0 %v1539_v43  ;;  %680 = vmatprep.subr.bf16.mxu1 %v1577_v53  ;;  %v1615_v43 = vld [vmem:[#allocation9 + $0x64] ss:$8 sps:$4 sm:$0xff]   ;;  %v1625_v53 = vld [vmem:[#allocation9 + $0x40] ss:$8 sps:$4 sm:$0xff]  }
  0x69   :  { %710 = vmatpush1.bf16.msra.mxu0 %v1537_v45  ;;  %681 = vmatpush2.bf16.msra.mxu1 %v1582_v56  ;;  %v1613_v45 = vld [vmem:[#allocation9 + $0x60] ss:$8 sps:$4 sm:$0xff]   ;;  %v1636_v56 = vld [vmem:[#allocation9 + $0x134] ss:$8 sps:$4 sm:$0xff]  }
  0x6a   :  { %711 = vmatprep.subr.bf16.mxu0 %v1545_v47  ;;  %682 = vmatprep.subr.bf16.mxu1 %v1583_v57  ;;  %v1621_v47 = vld [vmem:[#allocation9 + $0x54] ss:$8 sps:$4 sm:$0xff]   ;;  %v1631_v57 = vld [vmem:[#allocation9 + $0x30] ss:$8 sps:$4 sm:$0xff]  }
  0x6d   :  { %712 = vmatpush1.bf16.msra.mxu0 %v1543_v50  ;;  %683 = vmatpush2.bf16.msra.mxu1 %v1588_v60  ;;  %v1622_v50 = vld [vmem:[#allocation9 + $0x150] ss:$8 sps:$4 sm:$0xff]   ;;  %v1642_v60 = vld [vmem:[#allocation9 + $0x124] ss:$8 sps:$4 sm:$0xff]  }
  0x6e   :  { %713 = vmatprep.subr.bf16.mxu0 %v1551_v51  ;;  %684 = vmatprep.subr.bf16.mxu1 %v1589_v6  ;;  %v1627_v51 = vld [vmem:[#allocation9 + $0x44] ss:$8 sps:$4 sm:$0xff]   ;;  %v1652_v6 = vld [vmem:[#allocation9 + $0x100] ss:$8 sps:$4 sm:$0xff]  }
  0x71   :  { %714 = vmatpush1.bf16.msra.mxu0 %v1549_v54  ;;  %685 = vmatpush2.bf16.msra.mxu1 %v1594_v9  ;;  %v1628_v54 = vld [vmem:[#allocation9 + $0x140] ss:$8 sps:$4 sm:$0xff]   ;;  %v1655_v9 = vld [vmem:[#allocation9 + $0xf0] ss:$8 sps:$4 sm:$0xff]  }
  0x72   :  { %715 = vmatprep.subr.bf16.mxu0 %v1557_v55  ;;  %686 = vmatprep.subr.bf16.mxu1 %v1595_v10  ;;  %v1633_v55 = vld [vmem:[#allocation9 + $0x34] ss:$8 sps:$4 sm:$0xff]   ;;  %v1658_v10 = vld [vmem:[#allocation9 + $0x1f0] ss:$8 sps:$4 sm:$0xff]  }
  0x75   :  { %716 = vmatpush1.bf16.msra.mxu0 %v1555_v58  ;;  %687 = vmatpush2.bf16.msra.mxu1 %v1600_v13  ;;  %v1634_v58 = vld [vmem:[#allocation9 + $0x130] ss:$8 sps:$4 sm:$0xff]   ;;  %v1661_v13 = vld [vmem:[#allocation9 + $0xe0] ss:$8 sps:$4 sm:$0xff]  }
  0x76   :  { %717 = vmatprep.subr.bf16.mxu0 %v1563_v59  ;;  %688 = vmatprep.subr.bf16.mxu1 %v1601_v14  ;;  %v1639_v59 = vld [vmem:[#allocation9 + $0x24] ss:$8 sps:$4 sm:$0xff]   ;;  %v1664_v14 = vld [vmem:[#allocation9 + $0x1e0] ss:$8 sps:$4 sm:$0xff]  }
  0x79   :  { %718 = vmatpush2.bf16.msra.mxu0 %v1561_v61  ;;  %689 = vmatpush2.bf16.msra.mxu1 %v1606_v17  ;;  %v1637_v61 = vld [vmem:[#allocation9 + $0x20] ss:$8 sps:$4 sm:$0xff]   ;;  %v1667_v17 = vld [vmem:[#allocation9 + $0xd0] ss:$8 sps:$4 sm:$0xff]  }
  0x7a   :  { %719 = vmatprep.subr.bf16.mxu0 %v1569_v62  ;;  %1200 = vmatprep.subr.bf16.mxu1 %v1609_v18  ;;  %v1640_v62 = vld [vmem:[#allocation9 + $0x120] ss:$8 sps:$4 sm:$0xff]   ;;  %v1670_v18 = vld [vmem:[#allocation9 + $0x1d0] ss:$8 sps:$4 sm:$0xff]  }
  0x7d   :  { %720 = vmatpush2.bf16.msra.mxu0 %v1567_v63  ;;  %v1645_v63 = vld [vmem:[#allocation9 + $0x14] ss:$8 sps:$4 sm:$0xff]  }
  0x7e   :  { %721 = vmatprep.subr.bf16.mxu0 %v1575_v0  ;;  %v1648_v0 = vld [vmem:[#allocation9 + $0x114] ss:$8 sps:$4 sm:$0xff]  }
  0x81   :  { %722 = vmatpush2.bf16.msra.mxu0 %v1573_v1  ;;  %v1643_v1 = vld [vmem:[#allocation9 + $0x10] ss:$8 sps:$4 sm:$0xff]  }
  0x82   :  { %723 = vmatprep.subr.bf16.mxu0 %v1581_v2  ;;  %v1646_v2 = vld [vmem:[#allocation9 + $0x110] ss:$8 sps:$4 sm:$0xff]  }
  0x85   :  { %724 = vmatpush2.bf16.msra.mxu0 %v1579_v3  ;;  %v1651_v3 = vld [vmem:[#allocation9 + $0x4] ss:$8 sps:$4 sm:$0xff]  }
  0x86   :  { %725 = vmatprep.subr.bf16.mxu0 %v1587_v4  ;;  %v1654_v4 = vld [vmem:[#allocation9 + $0x104] ss:$8 sps:$4 sm:$0xff]  }
  0x89   :  { %726 = vmatpush2.bf16.msra.mxu0 %v1585_v5  ;;  %v1649_v5 = vld [vmem:[#allocation9] ss:$8 sps:$4 sm:$0xff]  }
  0x8a   :  { %727 = vmatprep.subr.bf16.mxu0 %v1593_v7  ;;  %v1657_v7 = vld [vmem:[#allocation9 + $0xf4] ss:$8 sps:$4 sm:$0xff]  }
  0x8d   :  { %728 = vmatpush2.bf16.msra.mxu0 %v1591_v8  ;;  %v1660_v8 = vld [vmem:[#allocation9 + $0x1f4] ss:$8 sps:$4 sm:$0xff]  }
  0x8e   :  { %729 = vmatprep.subr.bf16.mxu0 %v1599_v11  ;;  %v1663_v11 = vld [vmem:[#allocation9 + $0xe4] ss:$8 sps:$4 sm:$0xff]  }
  0x91   :  { %730 = vmatpush2.bf16.msra.mxu0 %v1597_v12  ;;  %v1666_v12 = vld [vmem:[#allocation9 + $0x1e4] ss:$8 sps:$4 sm:$0xff]  }
  0x92   :  { %731 = vmatprep.subr.bf16.mxu0 %v1605_v15  ;;  %v1669_v15 = vld [vmem:[#allocation9 + $0xd4] ss:$8 sps:$4 sm:$0xff]  }
  0x95   :  { %732 = vmatpush2.bf16.msra.mxu0 %v1603_v16  ;;  %v1672_v16 = vld [vmem:[#allocation9 + $0x1d4] ss:$8 sps:$4 sm:$0xff]  }
  0x96   :  { %1243 = vmatprep.subr.bf16.mxu0 %v1612_v19  ;;  %v1675_v19 = vld [vmem:[#allocation9 + $0xc4] ss:$8 sps:$4 sm:$0xff]  }
 0x118   :  { %v237_v25 = vpop.f32.mrf.mxu0 }
 0x119   :  { %v238_v32 = vadd.f32 %v237_v25, %v110_v27  ;;  %v1676_v25 = vld [vmem:[#allocation9 + $0x1c0] ss:$8 sps:$4 sm:$0xff]  }
 0x11a   :  { %v239_v28 = vpop.f32.mrf.mxu0 }
 0x11b   :  { %v240_v30 = vadd.f32 %v239_v28, %v114_v26  ;;  %v246_v38 = vmax.f32 %v238_v32, 0.0  ;;  %v1679_v28 = vld [vmem:[#allocation9 + $0xb0] ss:$8 sps:$4 sm:$0xff]   ;;  %v1685_v32 = vld [vmem:[#allocation9 + $0xa0] ss:$8 sps:$4 sm:$0xff]  }
 0x11c   :  { %v241_v29 = vpop.f32.mrf.mxu0 }
 0x11d   :  { %v242_v31 = vadd.f32 %v241_v29, %v110_v27  ;;  %v247_v36 = vmax.f32 %v240_v30, 0.0  ;;  %v1684_v27 = vld [vmem:[#allocation9 + $0x1b4] ss:$8 sps:$4 sm:$0xff]   ;;  %v1682_v29 = vld [vmem:[#allocation9 + $0x1b0] ss:$8 sps:$4 sm:$0xff]  }
 0x11e   :  { %v243_v33 = vpop.f32.mrf.mxu0  ;;  %v1687_v30 = vld [vmem:[#allocation9 + $0xa4] ss:$8 sps:$4 sm:$0xff]  }
 0x11f   :  { %v244_v34 = vadd.f32 %v243_v33, %v114_v26  ;;  %v248_v35 = vmax.f32 %v242_v31, 0.0  ;;  %v1681_v26 = vld [vmem:[#allocation9 + $0xb4] ss:$8 sps:$4 sm:$0xff]   ;;  %v1690_v31 = vld [vmem:[#allocation9 + $0x1a4] ss:$8 sps:$4 sm:$0xff]  }
 0x120   :  { %v1688_v33 = vld [vmem:[#allocation9 + $0x1a0] ss:$8 sps:$4 sm:$0xff]  }
 0x121   :  { %v249_v37 = vmax.f32 %v244_v34, 0.0  ;;  %v250_v42 = vpack.c.bf16 %v248_v35, %v246_v38  ;;  %v1693_v34 = vld [vmem:[#allocation9 + $0x94] ss:$8 sps:$4 sm:$0xff]   ;;  %v1699_v38 = vld [vmem:[#allocation9 + $0x84] ss:$8 sps:$4 sm:$0xff]  }
 0x122   :  { %v1696_v35 = vld [vmem:[#allocation9 + $0x194] ss:$8 sps:$4 sm:$0xff]  }
 0x123   :  { %v251_v39 = vpack.c.bf16 %v249_v37, %v247_v36  ;;  %v1691_v36 = vld [vmem:[#allocation9 + $0x90] ss:$8 sps:$4 sm:$0xff]  }
 0x124   :  { %v1694_v37 = vld [vmem:[#allocation9 + $0x190] ss:$8 sps:$4 sm:$0xff]  }
 0x125   :  { %690 = vmatprep.mubr.bf16.mxu1 %v251_v39  ;;  %733 = vmatprep.mubr.bf16.mxu0 %v251_v39  ;;  %v1702_v39 = vld [vmem:[#allocation9 + $0x184] ss:$8 sps:$4 sm:$0xff]  }
 0x126   :  { %691 = vmatmul.mubr.bf16.vlgmr.msra.gmra.mxu1 %v250_v42  ;;  %734 = vmatmul.mubr.bf16.vlgmr.msra.gmra.mxu0 %v250_v42  ;;  %v332_v42 = vsub.s32 3, %v1892_v21 }
 0x127   :  { %1201 = vmatpush1.bf16.msra.mxu1 %v1607_v40  ;;  %1244 = vmatpush1.bf16.msra.mxu0 %v1610_v41  ;;  %v1697_v40 = vld [vmem:[#allocation9 + $0x80] ss:$8 sps:$4 sm:$0xff]  }
 0x128   :  { %1202 = vmatprep.subr.bf16.mxu1 %v1615_v43  ;;  %1245 = vmatprep.subr.bf16.mxu0 %v1618_v44  ;;  %v1700_v41 = vld [vmem:[#allocation9 + $0x180] ss:$8 sps:$4 sm:$0xff]   ;;  %v328_v43 = vsub.s32 2, %v1892_v21  ;;  %v316_v44 = vld [vmem:[%s1927_s4] sm:$0xf] }
 0x12b   :  { %1203 = vmatpush1.bf16.msra.mxu1 %v1613_v45  ;;  %1246 = vmatpush1.bf16.msra.mxu0 %v1616_v46 }
 0x12c   :  { %1204 = vmatprep.subr.bf16.mxu1 %v1621_v47  ;;  %1247 = vmatprep.subr.bf16.mxu0 %v1624_v48  ;;  %v325_v47 = vrot.slane %v316_v44, %v1895_v22  ;;  %v333_v48 = vrot.slane %v316_v44, %v332_v42 }
 0x12f   :  { %1205 = vmatpush1.bf16.msra.mxu1 %v1619_v49  ;;  %1248 = vmatpush1.bf16.msra.mxu0 %v1622_v50  ;;  %v321_v49 = vrot.slane %v316_v44, %v1898_v23  ;;  %v329_v50 = vrot.slane %v316_v44, %v328_v43 }
 0x130   :  { %1206 = vmatprep.subr.bf16.mxu1 %v1627_v51  ;;  %1249 = vmatprep.subr.bf16.mxu0 %v1630_v52 }
 0x133   :  { %1207 = vmatpush1.bf16.msra.mxu1 %v1625_v53  ;;  %1250 = vmatpush1.bf16.msra.mxu0 %v1628_v54 }
 0x134   :  { %1208 = vmatprep.subr.bf16.mxu1 %v1633_v55  ;;  %1251 = vmatprep.subr.bf16.mxu0 %v1636_v56 }
 0x137   :  { %1209 = vmatpush1.bf16.msra.mxu1 %v1631_v57  ;;  %1252 = vmatpush1.bf16.msra.mxu0 %v1634_v58 }
 0x138   :  { %1210 = vmatprep.subr.bf16.mxu1 %v1639_v59  ;;  %1253 = vmatprep.subr.bf16.mxu0 %v1642_v60 }
 0x13b   :  { %1211 = vmatpush1.bf16.msra.mxu1 %v1637_v61  ;;  %1254 = vmatpush1.bf16.msra.mxu0 %v1640_v62 }
 0x13c   :  { %1212 = vmatprep.subr.bf16.mxu1 %v1645_v63  ;;  %1255 = vmatprep.subr.bf16.mxu0 %v1648_v0 }
 0x13f   :  { %1213 = vmatpush1.bf16.msra.mxu1 %v1643_v1  ;;  %1256 = vmatpush1.bf16.msra.mxu0 %v1646_v2 }
 0x140   :  { %1214 = vmatprep.subr.bf16.mxu1 %v1651_v3  ;;  %1257 = vmatprep.subr.bf16.mxu0 %v1654_v4 }
 0x143   :  { %1215 = vmatpush1.bf16.msra.mxu1 %v1649_v5  ;;  %1258 = vmatpush1.bf16.msra.mxu0 %v1652_v6 }
 0x144   :  { %1216 = vmatprep.subr.bf16.mxu1 %v1657_v7  ;;  %1259 = vmatprep.subr.bf16.mxu0 %v1660_v8 }
 0x147   :  { %1217 = vmatpush2.bf16.msra.mxu1 %v1655_v9  ;;  %1260 = vmatpush2.bf16.msra.mxu0 %v1658_v10 }
 0x148   :  { %1218 = vmatprep.subr.bf16.mxu1 %v1663_v11  ;;  %1261 = vmatprep.subr.bf16.mxu0 %v1666_v12  ;;  %v848_v12 = vld [vmem:[%s1929_s6] sm:$0x3]  ;;  %s1830_s6 = smov [#allocation11]  }
 0x149   :  { %s1299_s27 = sshll.u32 %s1830_s6, 4  ;;  %s1300_s27 = int_to_ptr.vmem [resolvable:$true] %s1299_s27 }
 0x14a   :  { %s1791_s28 = scalar_lea.vmem %s1300_s27, 512  ;;  %p1796_p7 = scmp.lt.s32.totalorder %s1300_s27, %s1300_s27 }
 0x14b   :  { %1219 = vmatpush2.bf16.msra.mxu1 %v1661_v13  ;;  %1262 = vmatpush2.bf16.msra.mxu0 %v1664_v14  ;;  %v853_v13 = vrot.slane %v848_v12, %v1898_v23  ;;  %v857_v14 = vrot.slane %v848_v12, %v1895_v22  ;;  %p1792_p6 = scmp.ne.s32.totalorder %s1300_s27, %s1791_s28  ;;  %p1797_p8 = scmp.lt.s32.totalorder %s1791_s28, %s1791_s28 }
 0x14c   :  { %1220 = vmatprep.subr.bf16.mxu1 %v1669_v15  ;;  %1263 = vmatprep.subr.bf16.mxu0 %v1672_v16 }
 0x14d   :  { %p1798_p9 = por %p1797_p8, %p1796_p7 }
 0x14f   :  { %1221 = vmatpush2.bf16.msra.mxu1 %v1667_v17  ;;  %1264 = vmatpush2.bf16.msra.mxu0 %v1670_v18  ;;  %p1799_p10 = pnand %p1798_p9, %p1792_p6 }
 0x150   :  { %1222 = vmatprep.subr.bf16.mxu1 %v1675_v19  ;;  %1265 = vmatprep.subr.bf16.mxu0 %v1678_v20 }
 0x153   :  { %1223 = vmatpush2.bf16.msra.mxu1 %v1673_v24  ;;  %1266 = vmatpush2.bf16.msra.mxu0 %v1676_v25 }
 0x154   :  { %1224 = vmatprep.subr.bf16.mxu1 %v1681_v26  ;;  %1267 = vmatprep.subr.bf16.mxu0 %v1684_v27 }
 0x157   :  { %1225 = vmatpush2.bf16.msra.mxu1 %v1679_v28  ;;  %1268 = vmatpush2.bf16.msra.mxu0 %v1682_v29 }
 0x158   :  { %1226 = vmatprep.subr.bf16.mxu1 %v1687_v30  ;;  %1269 = vmatprep.subr.bf16.mxu0 %v1690_v31 }
 0x15b   :  { %1227 = vmatpush2.bf16.msra.mxu1 %v1685_v32  ;;  %1270 = vmatpush2.bf16.msra.mxu0 %v1688_v33 }
 0x15c   :  { %1228 = vmatprep.subr.bf16.mxu1 %v1693_v34  ;;  %1271 = vmatprep.subr.bf16.mxu0 %v1696_v35 }
 0x15f   :  { %1229 = vmatpush2.bf16.msra.mxu1 %v1691_v36  ;;  %1272 = vmatpush2.bf16.msra.mxu0 %v1694_v37 }
 0x160   :  { %1230 = vmatprep.subr.bf16.mxu1 %v1699_v38  ;;  %1273 = vmatprep.subr.bf16.mxu0 %v1702_v39 }
 0x163   :  { %1231 = vmatpush2.bf16.msra.mxu1 %v1697_v40  ;;  %1274 = vmatpush2.bf16.msra.mxu0 %v1700_v41 }
 0x1e6   :  { %v692_v45 = vpop.f32.mrf.mxu1  ;;  %v735_v46 = vpop.f32.mrf.mxu0 }
 0x1e7   :  { %v693_v58 = vadd.f32 %v692_v45, %v321_v49  ;;  %v736_v59 = vadd.f32 %v735_v46, %v329_v50 }
 0x1e8   :  { %v694_v51 = vpop.f32.mrf.mxu1  ;;  %v737_v52 = vpop.f32.mrf.mxu0 }
 0x1e9   :  { %v695_v55 = vadd.f32 %v694_v51, %v325_v47  ;;  %v738_v56 = vadd.f32 %v737_v52, %v333_v48  ;;  %v744_v6 = vmax.f32 %v693_v58, 0.0  ;;  %v746_v7 = vmax.f32 %v736_v59, 0.0 }
 0x1ea   :  { %v696_v53 = vpop.f32.mrf.mxu1  ;;  %v739_v54 = vpop.f32.mrf.mxu0 }
 0x1eb   :  { %v697_v57 = vadd.f32 %v696_v53, %v321_v49  ;;  %v740_v21 = vadd.f32 %v739_v54, %v329_v50  ;;  %v745_v2 = vmax.f32 %v695_v55, 0.0  ;;  %v747_v3 = vmax.f32 %v738_v56, 0.0 }
 0x1ec   :  { %v698_v60 = vpop.f32.mrf.mxu1  ;;  %v741_v61 = vpop.f32.mrf.mxu0 }
 0x1ed   :  { %v699_v62 = vadd.f32 %v698_v60, %v325_v47  ;;  %v742_v63 = vadd.f32 %v741_v61, %v333_v48  ;;  %v748_v0 = vmax.f32 %v697_v57, 0.0  ;;  %v750_v1 = vmax.f32 %v740_v21, 0.0 }
 0x1ef   :  { %v749_v4 = vmax.f32 %v699_v62, 0.0  ;;  %v751_v5 = vmax.f32 %v742_v63, 0.0  ;;  %v1470_v10 = vpack.c.bf16 %v748_v0, %v744_v6  ;;  %v1472_v11 = vpack.c.bf16 %v750_v1, %v746_v7 }
 0x1f1   :  { %v1471_v8 = vpack.c.bf16 %v749_v4, %v745_v2  ;;  %v1473_v9 = vpack.c.bf16 %v751_v5, %v747_v3 }
 0x1f3   :  { %1232 = vmatprep.mubr.bf16.mxu1 %v1471_v8  ;;  %1275 = vmatprep.mubr.bf16.mxu0 %v1473_v9 }
 0x1f4   :  { %1233 = vmatmul.mubr.bf16.vlgmr.msra.gmra.mxu1 %v1470_v10  ;;  %1276 = vmatmul.mubr.bf16.vlgmr.msra.gmra.mxu0 %v1472_v11 }
 0x2b4   :  { %v1234_v15 = vpop.f32.mrf.mxu1  ;;  %v1277_v16 = vpop.f32.mrf.mxu0 }
 0x2b5   :  { %v1235_v17 = vadd.f32 %v1234_v15, %v853_v13 }
 0x2b6   :  { %v1236_v18 = vpop.f32.mrf.mxu1  ;;  %v1279_v19 = vpop.f32.mrf.mxu0 }
 0x2b7   :  { %v1278_v20 = vadd.f32 %v1277_v16, %v1235_v17  ;;  %v1237_v24 = vadd.f32 %v1236_v18, %v857_v14 }
 0x2b8   :  { %v1238_v25 = vpop.f32.mrf.mxu1  ;;  %v1281_v26 = vpop.f32.mrf.mxu0 }
 0x2b9   :  { %1703 = vtanh.f32 %v1278_v20  ;;  %v1280_v27 = vadd.f32 %v1279_v19, %v1237_v24  ;;  %v1239_v28 = vadd.f32 %v1238_v25, %v853_v13 }
 0x2ba   :  { %v1240_v29 = vpop.f32.mrf.mxu1  ;;  %v1283_v32 = vpop.f32.mrf.mxu0 }
 0x2bb   :  { %1705 = vtanh.f32 %v1280_v27  ;;  %v1282_v30 = vadd.f32 %v1281_v26, %v1239_v28  ;;  %v1241_v31 = vadd.f32 %v1240_v29, %v857_v14 }
 0x2bd   :  { %1707 = vtanh.f32 %v1282_v30  ;;  %v1284_v23 = vadd.f32 %v1283_v32, %v1241_v31 }
 0x2bf   :  { %1709 = vtanh.f32 %v1284_v23 }
 0x2c6   :  { %v1704_v22 = vpop.eup %1703 }
 0x2c7   :  { %1290 = vst [vmem:[#allocation11] sm:$0xff] %v1704_v22 }
 0x2c8   :  { %v1706_v33 = vpop.eup %1705 }
 0x2c9   :  { %1291 = vst [vmem:[#allocation11 + $0x8] sm:$0xff] %v1706_v33 }
 0x2ca   :  { %v1708_v34 = vpop.eup %1707 }
 0x2cb   :  { %1292 = vst [vmem:[#allocation11 + $0x10] sm:$0xff] %v1708_v34 }
 0x2cc   :  { %v1710_v35 = vpop.eup %1709 }
 0x2cd   :  { %1293 = vst [vmem:[#allocation11 + $0x18] sm:$0xff] %v1710_v35 }
 0x2ce   :  { %1802 = shalt.err (!%p1799_p10)
}
 0x2cf   :  { %1305 = dma.vmem_to_hbm [thread:$0]  %s1300_s27, 512, %s1930_s7, [#allocation5], %s1826_s17, %s1826_s17, %s1827_s18  }
 0x2d0   :  { %1817 = dma.done.wait [#allocation5], 512  }
 0x2d1   :  { %1818 = vsyncadd [#allocation5], 4294966784 }
 0x2d2   :  { %1309 = vsyncpa [#allocation4], 1 }
 0x2d3   :  { %1310 = vsyncpa [#allocation7], 1 }
 0x2d4   :  { %1311 = vsyncpa [#allocation10], 1 }
 0x2d5   :  { %1312 = vsyncpa [#allocation5], 1 }

</bundles_post_ra>
